<compile_context>
chip_gen: v5e
topology: v5e:2x2
jax: 0.10.0
libtpu: 0.0.40
codegen_flags: <defaults>
</compile_context>

<pallas_src>
import jax
import jax.numpy as jnp
from jax.experimental import pallas as pl
from jax.experimental.pallas import tpu as pltpu


def _round_up(a: int, m: int) -> int:
    return (a + m - 1) // m * m


def _cnn_mid_tap_kernel(x_ref, w_ref, b_ref, o_ref):
    # x_ref: (TB, D) VMEM   w_ref: (1, D) VMEM   b_ref: (1,) SMEM   o_ref: (1, TB) VMEM
    x = x_ref[...].astype(jnp.float32)
    w = w_ref[...].astype(jnp.float32)
    # Single contraction over D producing a lane-dense (1, TB) row:
    #   out[0, t] = sum_d w[0, d] * x[t, d]
    # This is one (M=1, K=D, N=TB) contraction -- no zero taps, no relayout of a
    # per-row reduction result, and the store is an unmasked lane-dense write.
    acc = jax.lax.dot_general(
        w, x,
        dimension_numbers=(((1,), (1,)), ((), ())),
        preferred_element_type=jnp.float32,
    )  # (1, TB)
    o_ref[...] = (acc + b_ref[0]).astype(o_ref.dtype)


def cnn_forward(x, weight, bias, *, max_batch_tile=512):
    """x: (B, D); weight: (1, D, 3) as in PyTorch Conv1d; bias: (1,). Returns (B, 1)."""
    B, D = x.shape
    assert weight.shape == (1, D, 3)
    assert bias.shape == (1,)

    # Zero padding on a length-1 sequence kills taps 0 and 2 -> keep only the
    # middle tap, sliced in the wrapper so the kernel never sees dead weights.
    w_mid = weight[:, :, 1]  # (1, D)

    # Batch tiling: TB rows per grid step. TB=512 keeps the double-buffered
    # input tile (2 * TB * D * 4 bytes) tiny relative to VMEM even on v7x's
    # 64 MiB, while giving good DMA/compute overlap for large B.
    if B <= max_batch_tile:
        tb = _round_up(max(B, 1), 8)
        b_pad = tb
    else:
        tb = max_batch_tile
        b_pad = _round_up(B, tb)

    x_p = x if b_pad == B else jnp.pad(x, ((0, b_pad - B), (0, 0)))
    num_tiles = b_pad // tb

    out = pl.pallas_call(
        _cnn_mid_tap_kernel,
        out_shape=jax.ShapeDtypeStruct((num_tiles, tb), x.dtype),
        grid=(num_tiles,),
        in_specs=[
            pl.BlockSpec((tb, D), lambda i: (i, 0)),                 # x tile
            pl.BlockSpec((1, D), lambda i: (0, 0)),                  # middle-tap weights
            pl.BlockSpec(memory_space=pltpu.MemorySpace.SMEM),       # bias scalar
        ],
        out_specs=pl.BlockSpec((1, tb), lambda i: (i, 0)),           # lane-dense rows
        compiler_params=pltpu.CompilerParams(
            dimension_semantics=("parallel",),
        ),
        cost_estimate=pl.CostEstimate(
            flops=2 * b_pad * D,
            transcendentals=0,
            bytes_accessed=4 * (b_pad * D + D + b_pad),
        ),
    )(x_p, w_mid, bias)

    # (num_tiles, TB) -> (B, 1); trims the batch padding.
    return out.reshape(b_pad)[:B].reshape(B, 1)


def _ref_forward(x, weight, bias):
    # Pure-JAX reference: only the middle tap survives the zero padding.
    return x @ weight[0, :, 1][:, None] + bias


if __name__ == "__main__":
    key = jax.random.PRNGKey(0)
    kx, kw, kb, kx2 = jax.random.split(key, 4)

    B, D = 2, 32  # batch=2, input_dim=32

    # Deterministic Conv1d-style init: U(-1/sqrt(fan_in), 1/sqrt(fan_in)), fan_in = D * k
    bound = 1.0 / (D * 3.0) ** 0.5
    weight = jax.random.uniform(kw, (1, D, 3), minval=-bound, maxval=bound,
                                dtype=jnp.float32)
    bias = jax.random.uniform(kb, (1,), minval=-bound, maxval=bound,
                              dtype=jnp.float32)

    # Small shape (single tile, batch padded 2 -> 8).
    x = jax.random.normal(kx, (B, D), dtype=jnp.float32)
    out = jax.block_until_ready(cnn_forward(x, weight, bias))
    ref = _ref_forward(x, weight, bias)
    assert out.shape == (B, 1), out.shape
    assert jnp.allclose(out, ref, atol=1e-5, rtol=1e-5), (out, ref)

    # Larger shape to exercise the batch grid + padding path (B=640 -> 2 tiles of 512).
    B2 = 640
    x2 = jax.random.normal(kx2, (B2, D), dtype=jnp.float32)
    out2 = jax.block_until_ready(cnn_forward(x2, weight, bias))
    ref2 = _ref_forward(x2, weight, bias)
    assert out2.shape == (B2, 1), out2.shape
    assert jnp.allclose(out2, ref2, atol=1e-5, rtol=1e-5)

    print("KERNEL_OK")
</pallas_src>

<mosaic_0001>
module attributes {stable_mosaic.version = 11 : i64} {
  func.func @_cnn_mid_tap_kernel(%arg0: i32, %arg1: memref<8x32xf32, #tpu.memory_space<vmem>>, %arg2: memref<1x32xf32, #tpu.memory_space<vmem>>, %arg3: memref<1xf32, #tpu.memory_space<smem>>, %arg4: memref<1x8xf32, #tpu.memory_space<vmem>>) attributes {dimension_semantics = [#tpu.dimension_semantics<parallel>], iteration_bounds = array<i64: 1>, scalar_prefetch = 0 : i64, scratch_operands = 0 : i64, tpu.core_type = #tpu.core_type<tc>, window_params = [{transform_indices = @transform_0, window_bounds = array<i64: 8, 32>}, {pipeline_mode = #tpu.pipeline_mode<synchronous>, transform_indices = @transform_1, window_bounds = array<i64: 1, 32>}, {transform_indices = @transform_2, window_bounds = array<i64: 1>}, {transform_indices = @transform_3, window_bounds = array<i64: 1, 8>}]} {
    %c0 = arith.constant 0 : index
    %c0_0 = arith.constant 0 : index
    %0 = vector.load %arg1[%c0, %c0_0] : memref<8x32xf32, #tpu.memory_space<vmem>>, vector<8x32xf32>
    %c0_1 = arith.constant 0 : index
    %c0_2 = arith.constant 0 : index
    %1 = vector.load %arg2[%c0_1, %c0_2] : memref<1x32xf32, #tpu.memory_space<vmem>>, vector<1x32xf32>
    %cst = arith.constant dense<0.000000e+00> : vector<1x8xf32>
    %2 = tpu.matmul %1, %0, %cst {dimension_numbers = #tpu.dot_dimension_numbers<[1], [1], [0], [0], [0, 0, 1, 0], [], []>} : vector<1x32xf32>, vector<8x32xf32>, vector<1x8xf32> -> vector<1x8xf32>
    %c0_3 = arith.constant 0 : index
    %3 = memref.load %arg3[%c0_3] : memref<1xf32, #tpu.memory_space<smem>>
    %4 = vector.broadcast %3 : f32 to vector<1x8xf32>
    %5 = arith.addf %2, %4 : vector<1x8xf32>
    %c0_4 = arith.constant 0 : index
    %c0_5 = arith.constant 0 : index
    %6 = vector.load %arg4[%c0_4, %c0_5] : memref<1x8xf32, #tpu.memory_space<vmem>>, vector<1x8xf32>
    tpu.vector_store %arg4[%c0_4, %c0_5], %5 {strides = array<i32>} : memref<1x8xf32, #tpu.memory_space<vmem>>, vector<1x8xf32>,
    return
  }
  func.func @transform_0(%arg0: i32) -> (i32, i32) {
    %c0_i32 = arith.constant 0 : i32
    %c0_i32_0 = arith.constant 0 : i32
    return %arg0, %c0_i32 : i32, i32
  }
  func.func @transform_1(%arg0: i32) -> (i32, i32) {
    %c0_i32 = arith.constant 0 : i32
    %c0_i32_0 = arith.constant 0 : i32
    %c0_i32_1 = arith.constant 0 : i32
    return %c0_i32, %c0_i32_0 : i32, i32
  }
  func.func @transform_2(%arg0: i32) -> i32 {
    %c0_i32 = arith.constant 0 : i32
    %c0_i32_0 = arith.constant 0 : i32
    return %c0_i32 : i32
  }
  func.func @transform_3(%arg0: i32) -> (i32, i32) {
    %c0_i32 = arith.constant 0 : i32
    %c0_i32_0 = arith.constant 0 : i32
    return %arg0, %c0_i32 : i32, i32
  }
}

</mosaic_0001>

<bundles_post_ra>
// kernel: tpu_custom_call.1
= control target key start
LH: loop header
LB: loop body
LE: loop exit
PB: predicated region body
PF: predicated region fallthrough
CT: control target
= control target key end

     0   :  { %9 = vsyncpa [#allocation4], 0  ;;  %s170_s0 = inlined_call_operand.hbm [shape: f32[8,32], index: 0, kind: input, shape index: {}]   ;;  %s171_s1 = inlined_call_operand.vmem [shape: f32[1,32], index: 1, kind: input, shape index: {}]   ;;  %s172_s2 = inlined_call_operand.<no memory space> [shape: f32[1], index: 2, kind: input, shape index: {}]   ;;  %s173_s3 = inlined_call_operand.hbm [shape: f32[1,8], index: 3, kind: output, shape index: {}]  }
   0x1   :  { %10 = vsyncpa [#allocation5], 0  ;;  %s16_s14 = sshll.u32 %s170_s0, 4  ;;  %s136_s15 = smov [#allocation3]   ;;  %s17_s14 = int_to_ptr.hbm [resolvable:$true] %s16_s14 }
   0x2   :  { %s18_s16 = sshll.u32 %s136_s15, 4  ;;  %s19_s16 = int_to_ptr.vmem [resolvable:$true] %s18_s16 }
   0x3   :  { %21 = dma.hbm_to_vmem [thread:$0]  %s17_s14, 128, %s19_s16, [#allocation4]  }
   0x4   :  { %132 = dma.done.wait [#allocation4], 128  }
   0x5   :  { %133 = vsyncadd [#allocation4], 4294967168  ;;  %vm34_vm0 = vcmask 261120   ;;  %v30_v0 = vld [vmem:[#allocation3] sm:$0xff]  ;;  %v33_v2 = vstv %s172_s2  ;;  %s137_s0 = smov [#allocation6]   ;;  %s70_s24 = sshll.u32 %s173_s3, 4  ;;  %s71_s24 = int_to_ptr.hbm [resolvable:$true] %s70_s24 }
   0x6   :  { %80 = vmatpush.xpose.msk.msra.mxu0 %vm34_vm0, %v30_v0  ;;  %v31_v1 = vld [vmem:[%s171_s1] sm:$0x1]  ;;  %s68_s21 = sshll.u32 %s137_s0, 4  ;;  %vm61_vm1 = vcmask 57344   ;;  %s69_s21 = int_to_ptr.vmem [resolvable:$true] %s68_s21 }
   0x9   :  { %81 = vmatmul.msk.f32.vlgmr.msra.gmra.mxu0 %vm34_vm0, %v31_v1 }
  0x86   :  { %v58_v3 = vpop.f32.mrf.mxu0 }
  0x87   :  { %v59_v4 = vadd.f32 %v58_v3, %v33_v2 }
  0x89   :  { %62 = vst.msk [vmem:[#allocation6] sm:$0x1] %vm61_vm1, %v59_v4 }
  0x8a   :  { %73 = dma.vmem_to_hbm [thread:$0]  %s69_s21, 16, %s71_s24, [#allocation5]  }
  0x8b   :  { %134 = dma.done.wait [#allocation5], 16  }
  0x8c   :  { %135 = vsyncadd [#allocation5], 4294967280 }
  0x8d   :  { %78 = vsyncpa [#allocation4], 1 }
  0x8e   :  { %79 = vsyncpa [#allocation5], 1 }

</bundles_post_ra>
